<compile_context>
chip_gen: v7x
topology: tpu7x:2x2x1
jax: 0.10.0
libtpu: 0.0.40
codegen_flags: <defaults>
</compile_context>

<pallas_src>
import functools

import jax
import jax.numpy as jnp
from jax import lax
from jax.experimental import pallas as pl
from jax.experimental.pallas import tpu as pltpu

GROUPS = 2
EPS = 1e-5


def upblock_kernel(x_ref, w_ref, bias_ref, gamma_ref, beta_ref, mask_ref, o_ref):
    # x_ref    : (1, H+2, Cin*W)    H-halo-padded input, lane index = ci*W + w
    # w_ref    : (3, Cin*W, Cout*W) banded conv weight, one matrix per kh tap
    # bias_ref : (1, Cout*W)        conv bias broadcast to lanes (co*W + w)
    # gamma_ref: (1, Cout*W)        GroupNorm scale per lane
    # beta_ref : (1, Cout*W)        GroupNorm shift per lane
    # mask_ref : (1, Cout*W)        1.0 where lane's channel belongs to group 0
    # o_ref    : (1, H, Cout*W)
    H = o_ref.shape[1]
    CW = o_ref.shape[2]

    x = x_ref[0]                                   # (H+2, Cin*W)

    # ---- 3x3 transposed conv == 3 banded matmuls (one per kh tap), on the MXU ----
    acc = jnp.dot(x[0:H], w_ref[0], preferred_element_type=jnp.float32)
    acc = acc + jnp.dot(x[1:H + 1], w_ref[1], preferred_element_type=jnp.float32)
    acc = acc + jnp.dot(x[2:H + 2], w_ref[2], preferred_element_type=jnp.float32)
    acc = acc + bias_ref[...]                      # (H, CW) + (1, CW)

    # ---- GroupNorm(2): single-pass masked statistics (all f32) ----
    g0 = mask_ref[...]                             # (1, CW)
    g1 = 1.0 - g0
    inv_n = 1.0 / (H * CW // GROUPS)               # elements per group (static)

    acc2 = acc * acc
    s0 = jnp.sum(acc * g0)
    s_all = jnp.sum(acc)
    q0 = jnp.sum(acc2 * g0)
    q_all = jnp.sum(acc2)

    mu0 = s0 * inv_n
    mu1 = (s_all - s0) * inv_n
    var0 = q0 * inv_n - mu0 * mu0
    var1 = (q_all - q0) * inv_n - mu1 * mu1
    rs0 = lax.rsqrt(var0 + EPS)
    rs1 = lax.rsqrt(var1 + EPS)

    # Per-lane scale/shift; gamma/beta/mean folded into a single FMA.
    mu = g0 * mu0 + g1 * mu1                       # (1, CW)
    rs = g0 * rs0 + g1 * rs1
    scale = gamma_ref[...] * rs
    shift = beta_ref[...] - mu * scale

    # ---- fused affine + ReLU, one pass over acc ----
    o_ref[0] = jnp.maximum(acc * scale + shift, 0.0)


def _banded_weight(wt, W):
    """Fold ConvTranspose2d(k=3, s=1, p=1) weight (Cin, Cout, 3, 3) into 3 banded
    matrices (Cin*W, Cout*W): the kw taps and W-edge zero padding are absorbed into
    the matmul contraction so the conv becomes 3 row-shifted matmuls."""
    # conv-equivalent weight: Wk[kh, kw, ci, co] = wt[ci, co, 2-kh, 2-kw]
    wk = jnp.flip(wt, axis=(2, 3)).transpose(2, 3, 0, 1)          # (3, 3, Cin, Cout)
    Cin, Cout = wt.shape[0], wt.shape[1]
    d = jnp.arange(W)[:, None] - jnp.arange(W)[None, :]           # w_in - w_out
    kw_idx = jnp.clip(d + 1, 0, 2)
    valid = jnp.abs(d) <= 1
    band = wk[:, kw_idx, :, :]                                    # (3, W, W, Cin, Cout)
    band = jnp.where(valid[None, :, :, None, None], band, 0.0)
    # (kh, w_in, w_out, ci, co) -> (kh, ci, w_in, co, w_out) -> (3, Cin*W, Cout*W)
    return band.transpose(0, 3, 1, 4, 2).reshape(3, Cin * W, Cout * W)


@functools.partial(jax.jit, static_argnames=("compute_dtype",))
def upblock_forward(x_nchw, wt, bias, gamma, beta, compute_dtype=jnp.float32):
    """x_nchw: (N, Cin, H, W); wt: ConvTranspose2d weight (Cin, Cout, 3, 3).
    compute_dtype=jnp.bfloat16 halves HBM/VMEM traffic for the matmul inputs on
    v6e/v7x (GroupNorm stays f32); default f32 matches the PyTorch module exactly."""
    N, Cin, H, W = x_nchw.shape
    Cout = wt.shape[1]
    CW = Cout * W

    bigw = _banded_weight(wt.astype(jnp.float32), W).astype(compute_dtype)

    # NCHW -> (N, H, Cin*W): W stays the minor dim (cheap relayout), then pad the H halo.
    xt = jnp.transpose(x_nchw, (0, 2, 1, 3)).reshape(N, H, Cin * W)
    xp = jnp.pad(xt, ((0, 0), (1, 1), (0, 0))).astype(compute_dtype)
    # TODO(synk): for large inputs, fold this transpose/pad into the kernel's producer
    # (CompilerParams(allow_input_fusion=[0])) or handle the H halo in-kernel, and add
    # an H-tiled grid axis with a two-pass GroupNorm so blocks fit v7x's 64 MiB VMEM.

    bias_l = jnp.repeat(bias.astype(jnp.float32), W).reshape(1, CW)
    gamma_l = jnp.repeat(gamma.astype(jnp.float32), W).reshape(1, CW)
    beta_l = jnp.repeat(beta.astype(jnp.float32), W).reshape(1, CW)
    mask_l = jnp.repeat(
        (jnp.arange(Cout) < Cout // GROUPS).astype(jnp.float32), W).reshape(1, CW)

    out = pl.pallas_call(
        upblock_kernel,
        out_shape=jax.ShapeDtypeStruct((N, H, CW), jnp.float32),
        grid_spec=pltpu.PrefetchScalarGridSpec(
            num_scalar_prefetch=0,
            grid=(N,),
            in_specs=[
                pl.BlockSpec((1, H + 2, Cin * W), lambda n: (n, 0, 0)),
                # Constant-index operands: their block index never changes across the
                # grid, so Pallas keeps them resident and does not re-DMA per step.
                pl.BlockSpec((3, Cin * W, CW), lambda n: (0, 0, 0)),
                pl.BlockSpec((1, CW), lambda n: (0, 0)),
                pl.BlockSpec((1, CW), lambda n: (0, 0)),
                pl.BlockSpec((1, CW), lambda n: (0, 0)),
                pl.BlockSpec((1, CW), lambda n: (0, 0)),
            ],
            out_specs=pl.BlockSpec((1, H, CW), lambda n: (n, 0, 0)),
        ),
        compiler_params=pltpu.CompilerParams(
            dimension_semantics=("parallel",),
            vmem_limit_bytes=32 * 1024 * 1024,   # raise together with tile sizes
        ),
    )(xp, bigw, bias_l, gamma_l, beta_l, mask_l)

    # (N, H, Cout*W) -> (N, Cout, H, W); W stays minor, so this is a cheap relayout.
    return jnp.transpose(out.reshape(N, H, Cout, W), (0, 2, 1, 3))


def reference_forward(x_nchw, wt, bias, gamma, beta):
    """Pure-JAX reference mirroring the PyTorch module semantics."""
    Cout = wt.shape[1]
    w_conv = jnp.flip(wt, axis=(2, 3)).transpose(1, 0, 2, 3)      # (Cout, Cin, 3, 3)
    y = lax.conv_general_dilated(
        x_nchw, w_conv, window_strides=(1, 1), padding=((1, 1), (1, 1)),
        dimension_numbers=("NCHW", "OIHW", "NCHW"),
        precision=lax.Precision.HIGHEST)
    y = y + bias.reshape(1, Cout, 1, 1)
    N, C, H, W = y.shape
    yg = y.reshape(N, GROUPS, C // GROUPS, H, W)
    mu = jnp.mean(yg, axis=(2, 3, 4), keepdims=True)
    var = jnp.mean((yg - mu) ** 2, axis=(2, 3, 4), keepdims=True)
    yg = (yg - mu) * lax.rsqrt(var + EPS)
    y = yg.reshape(N, C, H, W)
    y = y * gamma.reshape(1, C, 1, 1) + beta.reshape(1, C, 1, 1)
    return jnp.maximum(y, 0.0)


if __name__ == "__main__":
    N, Cin, Cout, H, W = 2, 4, 4, 16, 16

    key = jax.random.PRNGKey(0)
    k_x, k_w, k_b, k_g, k_be = jax.random.split(key, 5)

    x = jax.random.normal(k_x, (N, Cin, H, W), jnp.float32)
    # ConvTranspose2d weight shape: (in_channels, out_channels, kH, kW)
    wt = jax.random.normal(k_w, (Cin, Cout, 3, 3), jnp.float32) * 0.2
    bias = jax.random.normal(k_b, (Cout,), jnp.float32) * 0.1
    gamma = 1.0 + 0.1 * jax.random.normal(k_g, (Cout,), jnp.float32)
    beta = 0.1 * jax.random.normal(k_be, (Cout,), jnp.float32)

    out = upblock_forward(x, wt, bias, gamma, beta)
    out = jax.block_until_ready(out)

    ref = reference_forward(x, wt, bias, gamma, beta)
    assert out.shape == (N, Cout, H, W)
    assert jnp.max(jnp.abs(out - ref)) < 1e-4, "mismatch vs reference"

    print("KERNEL_OK")
</pallas_src>

<mosaic_0001>
module attributes {stable_mosaic.version = 11 : i64} {
  func.func @upblock_kernel(%arg0: i32, %arg1: memref<1x18x64xf32, #tpu.memory_space<vmem>>, %arg2: memref<3x64x64xf32, #tpu.memory_space<vmem>>, %arg3: memref<1x64xf32, #tpu.memory_space<vmem>>, %arg4: memref<1x64xf32, #tpu.memory_space<vmem>>, %arg5: memref<1x64xf32, #tpu.memory_space<vmem>>, %arg6: memref<1x64xf32, #tpu.memory_space<vmem>>, %arg7: memref<1x16x64xf32, #tpu.memory_space<vmem>>) attributes {dimension_semantics = [#tpu.dimension_semantics<parallel>], iteration_bounds = array<i64: 2>, scalar_prefetch = 0 : i64, scratch_operands = 0 : i64, tpu.core_type = #tpu.core_type<tc>, window_params = [{transform_indices = @transform_0, window_bounds = array<i64: 1, 18, 64>}, {pipeline_mode = #tpu.pipeline_mode<synchronous>, transform_indices = @transform_1, window_bounds = array<i64: 3, 64, 64>}, {pipeline_mode = #tpu.pipeline_mode<synchronous>, transform_indices = @transform_2, window_bounds = array<i64: 1, 64>}, {pipeline_mode = #tpu.pipeline_mode<synchronous>, transform_indices = @transform_3, window_bounds = array<i64: 1, 64>}, {pipeline_mode = #tpu.pipeline_mode<synchronous>, transform_indices = @transform_4, window_bounds = array<i64: 1, 64>}, {pipeline_mode = #tpu.pipeline_mode<synchronous>, transform_indices = @transform_5, window_bounds = array<i64: 1, 64>}, {transform_indices = @transform_6, window_bounds = array<i64: 1, 16, 64>}]} {
    %c0 = arith.constant 0 : index
    %c0_0 = arith.constant 0 : index
    %c0_1 = arith.constant 0 : index
    %0 = vector.load %arg1[%c0, %c0_0, %c0_1] : memref<1x18x64xf32, #tpu.memory_space<vmem>>, vector<1x18x64xf32>
    %1 = vector.shape_cast %0 : vector<1x18x64xf32> to vector<18x64xf32>
    %2 = vector.extract_strided_slice %1 {offsets = [0, 0], sizes = [16, 64], strides = [1, 1]} : vector<18x64xf32> to vector<16x64xf32>
    %c0_2 = arith.constant 0 : index
    %c0_3 = arith.constant 0 : index
    %c0_4 = arith.constant 0 : index
    %3 = vector.load %arg2[%c0_2, %c0_3, %c0_4] : memref<3x64x64xf32, #tpu.memory_space<vmem>>, vector<1x64x64xf32>
    %4 = vector.shape_cast %3 : vector<1x64x64xf32> to vector<64x64xf32>
    %cst = arith.constant dense<0.000000e+00> : vector<16x64xf32>
    %5 = tpu.matmul %2, %4, %cst {dimension_numbers = #tpu.dot_dimension_numbers<[1], [0], [0], [1], [0, 0, 1, 1], [], []>} : vector<16x64xf32>, vector<64x64xf32>, vector<16x64xf32> -> vector<16x64xf32>
    %6 = vector.extract_strided_slice %1 {offsets = [1, 0], sizes = [16, 64], strides = [1, 1]} : vector<18x64xf32> to vector<16x64xf32>
    %c1 = arith.constant 1 : index
    %c0_5 = arith.constant 0 : index
    %c0_6 = arith.constant 0 : index
    %7 = vector.load %arg2[%c1, %c0_5, %c0_6] : memref<3x64x64xf32, #tpu.memory_space<vmem>>, vector<1x64x64xf32>
    %8 = vector.shape_cast %7 : vector<1x64x64xf32> to vector<64x64xf32>
    %cst_7 = arith.constant dense<0.000000e+00> : vector<16x64xf32>
    %9 = tpu.matmul %6, %8, %cst_7 {dimension_numbers = #tpu.dot_dimension_numbers<[1], [0], [0], [1], [0, 0, 1, 1], [], []>} : vector<16x64xf32>, vector<64x64xf32>, vector<16x64xf32> -> vector<16x64xf32>
    %10 = arith.addf %5, %9 : vector<16x64xf32>
    %11 = vector.extract_strided_slice %1 {offsets = [2, 0], sizes = [16, 64], strides = [1, 1]} : vector<18x64xf32> to vector<16x64xf32>
    %c2 = arith.constant 2 : index
    %c0_8 = arith.constant 0 : index
    %c0_9 = arith.constant 0 : index
    %12 = vector.load %arg2[%c2, %c0_8, %c0_9] : memref<3x64x64xf32, #tpu.memory_space<vmem>>, vector<1x64x64xf32>
    %13 = vector.shape_cast %12 : vector<1x64x64xf32> to vector<64x64xf32>
    %cst_10 = arith.constant dense<0.000000e+00> : vector<16x64xf32>
    %14 = tpu.matmul %11, %13, %cst_10 {dimension_numbers = #tpu.dot_dimension_numbers<[1], [0], [0], [1], [0, 0, 1, 1], [], []>} : vector<16x64xf32>, vector<64x64xf32>, vector<16x64xf32> -> vector<16x64xf32>
    %15 = arith.addf %10, %14 : vector<16x64xf32>
    %c0_11 = arith.constant 0 : index
    %c0_12 = arith.constant 0 : index
    %16 = vector.load %arg3[%c0_11, %c0_12] : memref<1x64xf32, #tpu.memory_space<vmem>>, vector<1x64xf32>
    %17 = vector.broadcast %16 : vector<1x64xf32> to vector<16x64xf32>
    %18 = arith.addf %15, %17 : vector<16x64xf32>
    %c0_13 = arith.constant 0 : index
    %c0_14 = arith.constant 0 : index
    %19 = vector.load %arg6[%c0_13, %c0_14] : memref<1x64xf32, #tpu.memory_space<vmem>>, vector<1x64xf32>
    %cst_15 = arith.constant 1.000000e+00 : f32
    %20 = vector.broadcast %cst_15 : f32 to vector<1x64xf32>
    %21 = arith.subf %20, %19 : vector<1x64xf32>
    %22 = arith.mulf %18, %18 : vector<16x64xf32>
    %23 = vector.broadcast %19 : vector<1x64xf32> to vector<16x64xf32>
    %24 = arith.mulf %18, %23 : vector<16x64xf32>
    %25 = vector.shape_cast %24 : vector<16x64xf32> to vector<1x16x64xf32>
    %cst_16 = arith.constant dense<0.000000e+00> : vector<1xf32>
    %26 = vector.multi_reduction <add>, %25, %cst_16 [1, 2] : vector<1x16x64xf32> to vector<1xf32>
    %27 = vector.shape_cast %26 : vector<1xf32> to vector<1x1x1xf32>
    %28 = vector.extract %27[0, 0, 0] : f32 from vector<1x1x1xf32>
    %29 = vector.shape_cast %18 : vector<16x64xf32> to vector<1x16x64xf32>
    %cst_17 = arith.constant dense<0.000000e+00> : vector<1xf32>
    %30 = vector.multi_reduction <add>, %29, %cst_17 [1, 2] : vector<1x16x64xf32> to vector<1xf32>
    %31 = vector.shape_cast %30 : vector<1xf32> to vector<1x1x1xf32>
    %32 = vector.extract %31[0, 0, 0] : f32 from vector<1x1x1xf32>
    %33 = vector.broadcast %19 : vector<1x64xf32> to vector<16x64xf32>
    %34 = arith.mulf %22, %33 : vector<16x64xf32>
    %35 = vector.shape_cast %34 : vector<16x64xf32> to vector<1x16x64xf32>
    %cst_18 = arith.constant dense<0.000000e+00> : vector<1xf32>
    %36 = vector.multi_reduction <add>, %35, %cst_18 [1, 2] : vector<1x16x64xf32> to vector<1xf32>
    %37 = vector.shape_cast %36 : vector<1xf32> to vector<1x1x1xf32>
    %38 = vector.extract %37[0, 0, 0] : f32 from vector<1x1x1xf32>
    %39 = vector.shape_cast %22 : vector<16x64xf32> to vector<1x16x64xf32>
    %cst_19 = arith.constant dense<0.000000e+00> : vector<1xf32>
    %40 = vector.multi_reduction <add>, %39, %cst_19 [1, 2] : vector<1x16x64xf32> to vector<1xf32>
    %41 = vector.shape_cast %40 : vector<1xf32> to vector<1x1x1xf32>
    %42 = vector.extract %41[0, 0, 0] : f32 from vector<1x1x1xf32>
    %cst_20 = arith.constant 0.001953125 : f32
    %43 = arith.mulf %28, %cst_20 : f32
    %44 = arith.subf %32, %28 : f32
    %cst_21 = arith.constant 0.001953125 : f32
    %45 = arith.mulf %44, %cst_21 : f32
    %cst_22 = arith.constant 0.001953125 : f32
    %46 = arith.mulf %38, %cst_22 : f32
    %47 = arith.mulf %43, %43 : f32
    %48 = arith.subf %46, %47 : f32
    %49 = arith.subf %42, %38 : f32
    %cst_23 = arith.constant 0.001953125 : f32
    %50 = arith.mulf %49, %cst_23 : f32
    %51 = arith.mulf %45, %45 : f32
    %52 = arith.subf %50, %51 : f32
    %cst_24 = arith.constant 9.99999974E-6 : f32
    %53 = arith.addf %48, %cst_24 : f32
    %54 = math.rsqrt %53 : f32
    %cst_25 = arith.constant 9.99999974E-6 : f32
    %55 = arith.addf %52, %cst_25 : f32
    %56 = math.rsqrt %55 : f32
    %57 = vector.broadcast %43 : f32 to vector<1x64xf32>
    %58 = arith.mulf %19, %57 : vector<1x64xf32>
    %59 = vector.broadcast %45 : f32 to vector<1x64xf32>
    %60 = arith.mulf %21, %59 : vector<1x64xf32>
    %61 = arith.addf %58, %60 : vector<1x64xf32>
    %62 = vector.broadcast %54 : f32 to vector<1x64xf32>
    %63 = arith.mulf %19, %62 : vector<1x64xf32>
    %64 = vector.broadcast %56 : f32 to vector<1x64xf32>
    %65 = arith.mulf %21, %64 : vector<1x64xf32>
    %66 = arith.addf %63, %65 : vector<1x64xf32>
    %c0_26 = arith.constant 0 : index
    %c0_27 = arith.constant 0 : index
    %67 = vector.load %arg4[%c0_26, %c0_27] : memref<1x64xf32, #tpu.memory_space<vmem>>, vector<1x64xf32>
    %68 = arith.mulf %67, %66 : vector<1x64xf32>
    %c0_28 = arith.constant 0 : index
    %c0_29 = arith.constant 0 : index
    %69 = vector.load %arg5[%c0_28, %c0_29] : memref<1x64xf32, #tpu.memory_space<vmem>>, vector<1x64xf32>
    %70 = arith.mulf %61, %68 : vector<1x64xf32>
    %71 = arith.subf %69, %70 : vector<1x64xf32>
    %72 = vector.broadcast %68 : vector<1x64xf32> to vector<16x64xf32>
    %73 = arith.mulf %18, %72 : vector<16x64xf32>
    %74 = vector.broadcast %71 : vector<1x64xf32> to vector<16x64xf32>
    %75 = arith.addf %73, %74 : vector<16x64xf32>
    %cst_30 = arith.constant 0.000000e+00 : f32
    %76 = vector.broadcast %cst_30 : f32 to vector<16x64xf32>
    %77 = arith.maximumf %75, %76 : vector<16x64xf32>
    %c0_31 = arith.constant 0 : index
    %c0_32 = arith.constant 0 : index
    %c0_33 = arith.constant 0 : index
    %78 = vector.load %arg7[%c0_31, %c0_32, %c0_33] : memref<1x16x64xf32, #tpu.memory_space<vmem>>, vector<1x16x64xf32>
    %79 = vector.shape_cast %78 : vector<1x16x64xf32> to vector<16x64xf32>
    %80 = vector.shape_cast %77 : vector<16x64xf32> to vector<1x16x64xf32>
    tpu.vector_store %arg7[%c0_31, %c0_32, %c0_33], %80 {strides = array<i32>} : memref<1x16x64xf32, #tpu.memory_space<vmem>>, vector<1x16x64xf32>,
    return
  }
  func.func @transform_0(%arg0: i32) -> (i32, i32, i32) {
    %c0_i32 = arith.constant 0 : i32
    %c0_i32_0 = arith.constant 0 : i32
    %c0_i32_1 = arith.constant 0 : i32
    return %arg0, %c0_i32, %c0_i32_0 : i32, i32, i32
  }
  func.func @transform_1(%arg0: i32) -> (i32, i32, i32) {
    %c0_i32 = arith.constant 0 : i32
    %c0_i32_0 = arith.constant 0 : i32
    %c0_i32_1 = arith.constant 0 : i32
    %c0_i32_2 = arith.constant 0 : i32
    return %c0_i32, %c0_i32_0, %c0_i32_1 : i32, i32, i32
  }
  func.func @transform_2(%arg0: i32) -> (i32, i32) {
    %c0_i32 = arith.constant 0 : i32
    %c0_i32_0 = arith.constant 0 : i32
    %c0_i32_1 = arith.constant 0 : i32
    return %c0_i32, %c0_i32_0 : i32, i32
  }
  func.func @transform_3(%arg0: i32) -> (i32, i32) {
    %c0_i32 = arith.constant 0 : i32
    %c0_i32_0 = arith.constant 0 : i32
    %c0_i32_1 = arith.constant 0 : i32
    return %c0_i32, %c0_i32_0 : i32, i32
  }
  func.func @transform_4(%arg0: i32) -> (i32, i32) {
    %c0_i32 = arith.constant 0 : i32
    %c0_i32_0 = arith.constant 0 : i32
    %c0_i32_1 = arith.constant 0 : i32
    return %c0_i32, %c0_i32_0 : i32, i32
  }
  func.func @transform_5(%arg0: i32) -> (i32, i32) {
    %c0_i32 = arith.constant 0 : i32
    %c0_i32_0 = arith.constant 0 : i32
    %c0_i32_1 = arith.constant 0 : i32
    return %c0_i32, %c0_i32_0 : i32, i32
  }
  func.func @transform_6(%arg0: i32) -> (i32, i32, i32) {
    %c0_i32 = arith.constant 0 : i32
    %c0_i32_0 = arith.constant 0 : i32
    %c0_i32_1 = arith.constant 0 : i32
    return %arg0, %c0_i32, %c0_i32_0 : i32, i32, i32
  }
}

</mosaic_0001>

<bundles_post_ra>
// kernel: upblock_forward.1
= control target key start
LH: loop header
LB: loop body
LE: loop exit
PB: predicated region body
PF: predicated region fallthrough
CT: control target
= control target key end

     0   :  { %s956_s21 = smov 0   ;;  %s1106_s0 = inlined_call_operand.vmem [shape: f32[2,18,64], index: 0, kind: input, shape index: {}]   ;;  %s1107_s1 = inlined_call_operand.vmem [shape: f32[3,64,64], index: 1, kind: input, shape index: {}]   ;;  %s1108_s2 = inlined_call_operand.vmem [shape: f32[1,64], index: 2, kind: input, shape index: {}]   ;;  %s1109_s3 = inlined_call_operand.vmem [shape: f32[1,64], index: 3, kind: input, shape index: {}]   ;;  %s1110_s4 = inlined_call_operand.vmem [shape: f32[1,64], index: 4, kind: input, shape index: {}]   ;;  %s1111_s5 = inlined_call_operand.vmem [shape: f32[1,64], index: 5, kind: input, shape index: {}]   ;;  %s1112_s6 = inlined_call_operand.vmem [shape: f32[2,16,64], index: 6, kind: output, shape index: {}]  }
   0x1 LB: > { %s715_s22 = sadd.s32 4294967295, %s919_s21   ;;  %p719_p0 = scmp.ge.s32.totalorder %s919_s21, 1  ;;  %s919_s21 = sphi %s956_s21, %s16_s21  }
   0x2   : > { %p212_p1 = scmp.lt.s32.totalorder %s919_s21, 3 }
   0x4   : > { %p213_p2 = pnand %p719_p0, %p212_p1 }
   0x5   : > { %v255_v0 = vld [vmem:[%s1107_s1] sm:$0xff] (!%p213_p2)  ;;  %v256_v1 = vld [vmem:[%s1107_s1 + $0x8] sm:$0xff] (!%p213_p2)  ;;  %v257_v2 = vld [vmem:[%s1107_s1 + $0x10] sm:$0xff] (!%p213_p2)  ;;  %p242_p3 = scmp.lt.s32.totalorder (!%p213_p2), %s715_s22, 1  ;;  %vm281_vm0 = vcmask (!%p213_p2), 523264   ;;  %vm275_vm1 = vcmask (!%p213_p2), 1046528   ;;  %v550_v51 = vlaneseq (!%p213_p2) }
   0x6   : > { %216 = sbr.rel (%p213_p2) target bundleno = 561 (0x231), region = 44  ;;  %v852_v3 = vpack.c.bf16 (!%p213_p2), %v256_v1, %v255_v0  ;;  %v258_v4 = vld [vmem:[%s1107_s1 + $0x18] sm:$0xff] (!%p213_p2)  ;;  %v259_v6 = vld [vmem:[%s1107_s1 + $0x20] sm:$0xff] (!%p213_p2)  ;;  %v260_v7 = vld [vmem:[%s1107_s1 + $0x28] sm:$0xff] (!%p213_p2)  ;;  %vm449_vm2 = vcmask (!%p213_p2), 1045504  }
   0x7   : > { %v856_v5 = vpack.c.bf16 (!%p213_p2), %v258_v4, %v257_v2  ;;  %v723_v8 = vld [vmem:[%s1107_s1 + $0x40] sm:$0xff] (!%p213_p2)  ;;  %v724_v9 = vld [vmem:[%s1107_s1 + $0x48] sm:$0xff] (!%p213_p2)  ;;  %v725_v11 = vld [vmem:[%s1107_s1 + $0x50] sm:$0xff] (!%p213_p2)  ;;  %v860_v13 = vpack.c.bf16 (!%p213_p2), %v260_v7, %v259_v6  ;;  %v551_v52 = vshrl.u32 (!%p213_p2), %v550_v51, 7 }
   0x8   : > { %853 = vmatprep.subr.bf16.mxu0 (!%p213_p2), %v852_v3  ;;  %v836_v10 = vpack.c.bf16 (!%p213_p2), %v724_v9, %v723_v8  ;;  %v726_v12 = vld [vmem:[%s1107_s1 + $0x58] sm:$0xff] (!%p213_p2)  ;;  %v727_v15 = vld [vmem:[%s1107_s1 + $0x60] sm:$0xff] (!%p213_p2)  ;;  %v728_v16 = vld [vmem:[%s1107_s1 + $0x68] sm:$0xff] (!%p213_p2) }
   0x9   : > { %855 = vmatpush3.bf16.msra.mxu0 (!%p213_p2), %v852_v3  ;;  %v840_v14 = vpack.c.bf16 (!%p213_p2), %v726_v12, %v725_v11  ;;  %v261_v17 = vld [vmem:[%s1107_s1 + $0x30] sm:$0xff] (!%p213_p2)  ;;  %v262_v18 = vld [vmem:[%s1107_s1 + $0x38] sm:$0xff] (!%p213_p2)  ;;  %v844_v22 = vpack.c.bf16 (!%p213_p2), %v728_v16, %v727_v15  ;;  %v735_v27 = vld [vmem:[%s1107_s1 + $0x80] sm:$0xff] (!%p213_p2)  ;;  %v1052_v53 = vsub.s32 (!%p213_p2), 0, %v551_v52 }
   0xa   : > { %857 = vmatprep.subr.bf16.mxu0 (!%p213_p2), %v856_v5  ;;  %837 = vmatprep.subr.bf16.mxu1 (!%p213_p2), %v836_v10  ;;  %v864_v23 = vpack.c.bf16 (!%p213_p2), %v262_v18, %v261_v17  ;;  %v729_v24 = vld [vmem:[%s1107_s1 + $0x70] sm:$0xff] (!%p213_p2)  ;;  %v730_v25 = vld [vmem:[%s1107_s1 + $0x78] sm:$0xff] (!%p213_p2)  ;;  %v736_v28 = vld [vmem:[%s1107_s1 + $0x88] sm:$0xff] (!%p213_p2) }
   0xb   : > { %839 = vmatpush3.bf16.msra.mxu1 (!%p213_p2), %v836_v10  ;;  %v848_v31 = vpack.c.bf16 (!%p213_p2), %v730_v25, %v729_v24  ;;  %v868_v33 = vpack.c.bf16 (!%p213_p2), %v736_v28, %v735_v27  ;;  %v737_v35 = vld [vmem:[%s1107_s1 + $0x90] sm:$0xff] (!%p213_p2)  ;;  %v738_v36 = vld [vmem:[%s1107_s1 + $0x98] sm:$0xff] (!%p213_p2)  ;;  %v739_v40 = vld [vmem:[%s1107_s1 + $0xa0] sm:$0xff] (!%p213_p2) }
   0xc   : > { %841 = vmatprep.subr.bf16.mxu1 (!%p213_p2), %v840_v14  ;;  %v872_v38 = vpack.c.bf16 (!%p213_p2), %v738_v36, %v737_v35  ;;  %v740_v41 = vld [vmem:[%s1107_s1 + $0xa8] sm:$0xff] (!%p213_p2)  ;;  %v741_v44 = vld [vmem:[%s1107_s1 + $0xb0] sm:$0xff] (!%p213_p2)  ;;  %v742_v45 = vld [vmem:[%s1107_s1 + $0xb8] sm:$0xff] (!%p213_p2) }
   0xd   : > { %s1114_s22 = smov (!%p242_p3, %s715_s22), 1  ;;  %859 = vmatpush3.bf16.msra.mxu0 %v856_v5  ;;  %v876_v43 = vpack.c.bf16 %v740_v41, %v739_v40  ;;  %v880_v46 = vpack.c.bf16 %v742_v45, %v741_v44  ;;  %v1057_v54 = vld [vmem:[%s1111_s5] sm:$0x1] }
   0xe   : > { %s888_s15 = smul.u32 24, %s1114_s22  ;;  %861 = vmatprep.subr.bf16.mxu0 %v860_v13  ;;  %v745_v56 = vld [vmem:[%s1108_s2] ss:$0 sm:$0xff]  ;;  %v553_v59 = vrot.slane %v1057_v54, %v1052_v53  ;;  %v546_v45 = vsub.f32 1.0, %v1057_v54 }
   0xf   : > { %843 = vmatpush3.bf16.msra.mxu1 %v840_v14 }
  0x10   : > { %s246_s8 = scalar_lea.vmem %s1106_s0, %s888_s15  ;;  %845 = vmatprep.subr.bf16.mxu1 %v844_v22 }
  0x11   : > { %v252_v19 = vld [vmem:[%s246_s8] sm:$0xff]  ;;  %v253_v21 = vld [vmem:[%s246_s8 + $0x8] sm:$0xff]  ;;  %863 = vmatpush3.bf16.msra.mxu0 %v860_v13  ;;  %v254_v30 = vld [vmem:[%s246_s8 + $0x10] sm:$0x3] }
  0x12   : > { %v276_v20 = vrot.slane %v252_v19, 1  ;;  %814 = vmatprep.mubr.msk.f32.mxu0 %vm281_vm0, %v252_v19  ;;  %v277_v26 = vrot.slane %v253_v21, 1  ;;  %865 = vmatprep.subr.bf16.mxu0 %v864_v23  ;;  %v450_v32 = vrot.slane %v252_v19, 2  ;;  %v451_v34 = vrot.slane %v253_v21, 2 }
  0x13   : > { %v279_v37 = vrot.slane %v254_v30, 1  ;;  %847 = vmatpush3.bf16.msra.mxu1 %v844_v22  ;;  %v453_v47 = vrot.slane %v254_v30, 2 }
  0x14   : > { %v278_v29 = vsel %vm275_vm1, %v276_v20, %v277_v26  ;;  %849 = vmatprep.subr.bf16.mxu1 %v848_v31  ;;  %v452_v39 = vsel %vm449_vm2, %v450_v32, %v451_v34 }
  0x15   : > { %795 = vmatprep.mubr.msk.f32.mxu1 %vm281_vm0, %v278_v29  ;;  %867 = vmatpush3.bf16.msra.mxu0 %v864_v23  ;;  %v280_v42 = vsel %vm275_vm1, %v277_v26, %v279_v37  ;;  %v454_v48 = vsel %vm449_vm2, %v451_v34, %v453_v47 }
  0x16   : > { %869 = vmatprep.subr.bf16.mxu0 %v868_v33 }
  0x17   : > { %851 = vmatpush3.bf16.msra.mxu1 %v848_v31 }
  0x18   : > { %815 = vmatmul.mubr.msk.f32.vlgmr.msra.gmra.mrb[0].mxu0 %vm281_vm0, %v253_v21 }
  0x19   : > { %871 = vmatpush3.bf16.msra.mxu0 %v868_v33  ;;  %833 = vmatprep.mubr.msk.f32.mxu0 %vm281_vm0, %v452_v39 }
  0x1a   : > { %873 = vmatprep.subr.bf16.mxu0 %v872_v38  ;;  %796 = vmatmul.mubr.msk.f32.vlgmr.msra.gmra.mrb[0].mxu1 %vm281_vm0, %v280_v42 }
  0x1d   : > { %875 = vmatpush3.bf16.msra.mxu0 %v872_v38 }
  0x1e   : > { %877 = vmatprep.subr.bf16.mxu0 %v876_v43 }
  0x21   : > { %879 = vmatpush3.bf16.msra.mxu0 %v876_v43 }
  0x22   : > { %881 = vmatprep.subr.bf16.mxu0 %v880_v46 }
  0x25   : > { %883 = vmatpush3.bf16.msra.mxu0 %v880_v46 }
  0x28   : > { %834 = vmatmul.mubr.msk.f32.vlgmr.msra.gmra.mrb[0].mxu0 %vm281_vm0, %v454_v48 }
  0xed   : > { %v797_v49 = vpop.f32.mrb[0].mxu1 }
  0xee   : > { %v352_v50 = vpop.f32.mrb[1].mxu1 }
  0xfb   : > { %v835_v55 = vpop.f32.mrb[0].mxu0 }
  0xfc   : > { %v884_v57 = vadd.f32 %v835_v55, %v797_v49  ;;  %v525_v58 = vpop.f32.mrb[1].mxu0 }
  0xfd   : > { %v885_v60 = vadd.f32 %v525_v58, %v352_v50 }
  0xfe   : > { %v1064_v61 = vadd.f32 %v884_v57, %v745_v56 }
  0xff   : > { %v1066_v62 = vadd.f32 %v885_v60, %v745_v56 }
 0x100   : > { %v556_v63 = vmul.f32 %v553_v59, %v1064_v61  ;;  %v548_v0 = vmul.f32 %v1064_v61, %v1064_v61  ;;  %v570_v11 = vsel %vm281_vm0, %v1064_v61, 0.0 }
 0x101   : > { %v555_v1 = vmul.f32 %v553_v59, %v1066_v62  ;;  %v547_v2 = vmul.f32 %v1066_v62, %v1066_v62  ;;  %v569_v10 = vsel %vm281_vm0, %v1066_v62, 0.0 }
 0x102   : > { %v558_v3 = vsel %vm281_vm0, %v556_v63, 0.0  ;;  %v582_v4 = vmul.f32 %v553_v59, %v548_v0  ;;  %v596_v14 = vsel %vm281_vm0, %v548_v0, 0.0  ;;  %v571_v15 = vadd.f32 %v570_v11, %v569_v10  ;;  %v635_v63 = vld [vmem:[%s1109_s3] sm:$0x1] }
 0x103   : > { %v557_v5 = vsel %vm281_vm0, %v555_v1, 0.0  ;;  %v581_v6 = vmul.f32 %v553_v59, %v547_v2  ;;  %v595_v13 = vsel %vm281_vm0, %v547_v2, 0.0  ;;  %v637_v2 = vld [vmem:[%s1110_s4] sm:$0x1] }
 0x104   : > { %v559_v7 = vadd.f32 %v558_v3, %v557_v5  ;;  %v584_v8 = vsel %vm281_vm0, %v582_v4, 0.0  ;;  %v597_v16 = vadd.f32 %v596_v14, %v595_v13 }
 0x105   : > { %v583_v9 = vsel %vm281_vm0, %v581_v6, 0.0 }
 0x106   : > { %560 = vadd.xlane.f32.xlu0 %v559_v7  ;;  %v585_v12 = vadd.f32 %v584_v8, %v583_v9 }
 0x108   : > { %586 = vadd.xlane.f32.xlu1 %v585_v12 }
 0x10a   : > { %572 = vadd.xlane.f32.xlu0 %v571_v15 }
 0x10c   : > { %598 = vadd.xlane.f32.xlu1 %v597_v16 }
 0x193   : > { %v561_v17 = vpop.xlane.xlu0 %560 }
 0x194   : > { %v562_v18 = vrot.slane %v561_v17, 4 }
 0x195   : > { %v587_v19 = vpop.xlane.xlu1 %586 }
 0x196   : > { %v563_v20 = vadd.f32 %v562_v18, %v561_v17  ;;  %v588_v21 = vrot.slane %v587_v19, 4 }
 0x197   : > { %v573_v22 = vpop.xlane.xlu0 %572 }
 0x198   : > { %v564_v23 = vrot.slane %v563_v20, 2  ;;  %v589_v24 = vadd.f32 %v588_v21, %v587_v19  ;;  %v574_v25 = vrot.slane %v573_v22, 4 }
 0x199   : > { %v599_v26 = vpop.xlane.xlu1 %598 }
 0x19a   : > { %v590_v27 = vrot.slane %v589_v24, 2  ;;  %v575_v28 = vadd.f32 %v574_v25, %v573_v22  ;;  %v600_v29 = vrot.slane %v599_v26, 4  ;;  %v565_v30 = vadd.f32 %v564_v23, %v563_v20 }
 0x19c   : > { %v576_v31 = vrot.slane %v575_v28, 2  ;;  %v601_v32 = vadd.f32 %v600_v29, %v599_v26  ;;  %v566_v33 = vrot.slane %v565_v30, 1  ;;  %v591_v34 = vadd.f32 %v590_v27, %v589_v24 }
 0x19e   : > { %v577_v35 = vadd.f32 %v576_v31, %v575_v28  ;;  %v602_v36 = vrot.slane %v601_v32, 2  ;;  %v567_v37 = vadd.f32 %v566_v33, %v565_v30  ;;  %v592_v38 = vrot.slane %v591_v34, 1 }
 0x1a0   : > { %v603_v39 = vadd.f32 %v602_v36, %v601_v32  ;;  %889 = vpush %v567_v37  ;;  %v578_v40 = vrot.slane %v577_v35, 1  ;;  %v593_v43 = vadd.f32 %v592_v38, %v591_v34 }
 0x1a2   : > { %v579_v41 = vadd.f32 %v578_v40, %v577_v35  ;;  %v604_v42 = vrot.slane %v603_v39, 1 }
 0x1a4   : > { %891 = vpush %v579_v41  ;;  %v605_v44 = vadd.f32 %v604_v42, %v603_v39 }
 0x1a5   : > { %893 = vpush %v593_v43 }
 0x1a6   : > { %895 = vpush %v605_v44 }
 0x1d1   : > { %s890_s11 = spop %889 }
 0x1d2   : > { %s607_s12 = smul.f32 0.001953125, %s890_s11 }
 0x1d4   : > { %s611_s13 = smul.f32 %s607_s12, %s607_s12  ;;  %v625_v46 = vstv %s607_s12 }
 0x1d5   : > { %s892_s14 = spop %891  ;;  %v626_v48 = vmul.f32 %v625_v46, %v1057_v54 }
 0x1d6   : > { %s608_s15 = ssub.f32 %s892_s14, %s890_s11  ;;  %s894_s16 = spop %893 }
 0x1d7   : > { %s610_s17 = smul.f32 0.001953125, %s894_s16  ;;  %s896_s18 = spop %895 }
 0x1d8   : > { %s609_s19 = smul.f32 0.001953125, %s608_s15  ;;  %s613_s20 = ssub.f32 %s896_s18, %s894_s16 }
 0x1d9   : > { %s612_s23 = ssub.f32 %s610_s17, %s611_s13  ;;  %s748_s11 = sshll.u32 %s1114_s22, 4 }
 0x1da   : > { %s615_s24 = smul.f32 %s609_s19, %s609_s19  ;;  %v627_v47 = vstv %s609_s19  ;;  %s251_s14 = scalar_lea.vmem %s1112_s6, %s748_s11 }
 0x1db   : > { %s617_s25 = sadd.f32 1e-05, %s612_s23  ;;  %s614_s26 = smul.f32 0.001953125, %s613_s20  ;;  %v628_v49 = vmul.f32 %v627_v47, %v546_v45 }
 0x1dd   : > { %v618_v50 = vstv %s617_s25  ;;  %s616_s27 = ssub.f32 %s614_s26, %s615_s24  ;;  %v629_v51 = vadd.f32 %v628_v49, %v626_v48 }
 0x1de   : > { %909 = vrsqrt.f32 %v618_v50 }
 0x1df   : > { %s621_s28 = sadd.f32 1e-05, %s616_s27 }
 0x1e1   : > { %v622_v52 = vstv %s621_s28 }
 0x1e2   : > { %911 = vrsqrt.f32 %v622_v52 }
 0x1e8   : > { %v910_v55 = vpop.eup %909 }
 0x1e9   : > { %897 = vpush %v910_v55 }
 0x1ec   : > { %v912_v56 = vpop.eup %911 }
 0x1ed   : > { %899 = vpush %v912_v56 }
 0x21a   : > { %s898_s29 = spop %897 }
 0x21b   : > { %v630_v57 = vstv %s898_s29 }
 0x21c   : > { %v631_v59 = vmul.f32 %v630_v57, %v1057_v54 }
 0x21e   : > { %s900_s30 = spop %899 }
 0x21f   : > { %v632_v58 = vstv %s900_s30 }
 0x220   : > { %v633_v60 = vmul.f32 %v632_v58, %v546_v45 }
 0x222   : > { %v634_v0 = vadd.f32 %v633_v60, %v631_v59 }
 0x224   : > { %v636_v1 = vmul.f32 %v635_v63, %v634_v0 }
 0x226   : > { %v638_v3 = vmul.f32 %v636_v1, %v629_v51  ;;  %v644_v4 = vrot.slane %v636_v1, %v1052_v53 }
 0x228   : > { %v639_v5 = vsub.f32 %v637_v2, %v638_v3  ;;  %v646_v6 = vmul.f32 %v644_v4, %v1066_v62  ;;  %v647_v54 = vmul.f32 %v644_v4, %v1064_v61 }
 0x22a   : > { %v652_v7 = vrot.slane %v639_v5, %v1052_v53 }
 0x22c   : > { %v654_v8 = vadd.f32 %v652_v7, %v646_v6  ;;  %v655_v9 = vadd.f32 %v652_v7, %v647_v54 }
 0x22e   : > { %v656_v10 = vmax.f32 %v654_v8, 0.0  ;;  %v657_v11 = vmax.f32 %v655_v9, 0.0 }
 0x230   : > { %658 = vst.msk [vmem:[%s251_s14] sm:$0xff] %vm281_vm0, %v656_v10  ;;  %659 = vst.msk [vmem:[%s251_s14 + $0x8] sm:$0xff] %vm281_vm0, %v657_v11 }
 0x231 PF: > { %s16_s21 = sadd.s32 1, %s919_s21  }
 0x232   : > { %p13_p4 = scmp.ge.s32.totalorder %s16_s21, 4  }
 0x234   :  { %15 = sbr.rel (!%p13_p4) target bundleno = 1 (0x1), region = 76 }

</bundles_post_ra>
